<compile_context>
chip_gen: v6e
topology: v6e:2x2x1
jax: 0.10.0
libtpu: 0.0.40
codegen_flags: <defaults>
</compile_context>

<pallas_src>
import jax
import jax.numpy as jnp
from jax.experimental import pallas as pl
from jax.experimental.pallas import tpu as pltpu


# ------------------------------ helpers --------------------------------------
def _round_up(x, m):
    return ((x + m - 1) // m) * m


def _pad_to(x, shape):
    pads = [(0, s - d) for d, s in zip(x.shape, shape)]
    return jnp.pad(x, pads)


def _vmem_limit_bytes():
    """Generation-aware VMEM budget (~75% of physical capacity)."""
    cap = 64 * 1024 * 1024  # conservative fallback = v7x per-TC capacity
    try:
        info = pltpu.get_tpu_info()
        cap = int(getattr(info, "vmem_capacity_bytes", cap) or cap)
    except Exception:
        pass
    return (cap * 3) // 4


def _spec(shape, index_map, *, single_buffered=False):
    """BlockSpec; optionally request single buffering (no double-buffer VMEM)."""
    if single_buffered and hasattr(pl, "Buffered"):
        try:
            return pl.BlockSpec(shape, index_map, pipeline_mode=pl.Buffered(1))
        except TypeError:
            pass
    return pl.BlockSpec(shape, index_map)


# ----------------------- fused single-block kernel (small N) ------------------
def _make_fused_kernel(num_layers, project_first, n_valid):
    """All layers fused; intermediate h never leaves VMEM."""

    def kernel(*refs):
        a_ref = refs[0]                         # (NP, NP)  bf16
        x_ref = refs[1]                         # (NP, FIP0) bf16
        w_refs = refs[2:2 + num_layers]         # (FIP_l, FOP_l) bf16
        b_refs = refs[2 + num_layers:2 + 2 * num_layers]   # (1, FOP_l) f32
        o_ref = refs[2 + 2 * num_layers]        # (NP, FCP) f32

        n_pad = a_ref.shape[0]
        row_ids = jax.lax.broadcasted_iota(jnp.int32, (n_pad, 1), 0)
        row_mask = row_ids < n_valid

        h = x_ref[...]                          # bf16
        for l in range(num_layers):             # static unroll
            w = w_refs[l][...]
            if project_first[l]:
                xw = jnp.dot(h, w, preferred_element_type=jnp.float32)
                agg = jnp.dot(a_ref[...], xw.astype(jnp.bfloat16),
                              preferred_element_type=jnp.float32)
            else:
                ah = jnp.dot(a_ref[...], h, preferred_element_type=jnp.float32)
                agg = jnp.dot(ah.astype(jnp.bfloat16), w,
                              preferred_element_type=jnp.float32)
            # f32 bias add; padded rows kept at exactly zero.
            hf = jnp.where(row_mask, agg + b_refs[l][...], 0.0)
            if l + 1 < num_layers:
                h = hf.astype(jnp.bfloat16)
            else:
                o_ref[...] = hf.astype(o_ref.dtype)

    return kernel


def _gcn_forward_fused(a_hat, features, params):
    n = a_hat.shape[0]
    num_layers = len(params)
    dims = [(w.shape[0], w.shape[1]) for (w, _) in params]
    padded = [(_round_up(fi, 128), _round_up(fo, 128)) for (fi, fo) in dims]
    project_first = tuple(fo <= fi for (fi, fo) in dims)

    np_ = _round_up(max(n, 128), 128)
    fip0 = padded[0][0]
    fcp = padded[-1][1]
    n_classes = dims[-1][1]

    a_pad = _pad_to(a_hat, (np_, np_)).astype(jnp.bfloat16)
    x_pad = _pad_to(features, (np_, fip0)).astype(jnp.bfloat16)
    w_pads = [_pad_to(w, (fip, fop)).astype(jnp.bfloat16)
              for (w, _), (fip, fop) in zip(params, padded)]
    b_pads = [_pad_to(b.reshape(1, -1).astype(jnp.float32), (1, fop))
              for (_, b), (_, fop) in zip(params, padded)]

    # Cost estimate (bf16 operands, f32 output).
    flops = 0
    bytes_accessed = 2 * np_ * np_ + 2 * np_ * fip0 + 4 * np_ * fcp
    for (fip, fop), pf in zip(padded, project_first):
        if pf:
            flops += 2 * np_ * fip * fop + 2 * np_ * np_ * fop
        else:
            flops += 2 * np_ * np_ * fip + 2 * np_ * fip * fop
        bytes_accessed += 2 * fip * fop + 4 * fop
    cost = pl.CostEstimate(flops=int(flops), transcendentals=0,
                           bytes_accessed=int(bytes_accessed))

    in_specs = (
        [_spec((np_, np_), lambda i: (0, 0), single_buffered=True),
         _spec((np_, fip0), lambda i: (0, 0), single_buffered=True)]
        + [_spec((fip, fop), lambda i: (0, 0), single_buffered=True)
           for (fip, fop) in padded]
        + [_spec((1, fop), lambda i: (0, 0), single_buffered=True)
           for (_, fop) in padded]
    )

    out_pad = pl.pallas_call(
        _make_fused_kernel(num_layers, project_first, n),
        out_shape=jax.ShapeDtypeStruct((np_, fcp), jnp.float32),
        grid_spec=pl.GridSpec(
            grid=(1,),
            in_specs=in_specs,
            out_specs=pl.BlockSpec((np_, fcp), lambda i: (0, 0)),
        ),
        compiler_params=pltpu.CompilerParams(
            dimension_semantics=("arbitrary",),
            vmem_limit_bytes=_vmem_limit_bytes(),
        ),
        cost_estimate=cost,
    )(a_pad, x_pad, *w_pads, *b_pads)

    return out_pad[:n, :n_classes]


# ------------------------- row-tiled kernel (larger N) -------------------------
def _make_layer_kernel(project_first, n_valid, row_tile):
    """One GraphConv layer; grid iterates (parallel) over node-row tiles."""

    def kernel(a_ref, h_ref, w_ref, b_ref, o_ref):
        row0 = pl.program_id(0) * row_tile
        row_ids = row0 + jax.lax.broadcasted_iota(jnp.int32, (row_tile, 1), 0)
        row_mask = row_ids < n_valid
        if project_first:
            # TODO(synk): for very wide f_in, hoist h@W into its own row-tiled
            # projection kernel instead of recomputing it per row tile.
            xw = jnp.dot(h_ref[...], w_ref[...], preferred_element_type=jnp.float32)
            agg = jnp.dot(a_ref[...], xw.astype(jnp.bfloat16),
                          preferred_element_type=jnp.float32)
        else:
            ah = jnp.dot(a_ref[...], h_ref[...], preferred_element_type=jnp.float32)
            agg = jnp.dot(ah.astype(jnp.bfloat16), w_ref[...],
                          preferred_element_type=jnp.float32)
        out = jnp.where(row_mask, agg + b_ref[...], 0.0)
        o_ref[...] = out.astype(o_ref.dtype)

    return kernel


def _gcn_forward_rowtiled(a_hat, features, params, row_tile):
    assert row_tile % 128 == 0, "row_tile must be a multiple of 128"
    n = a_hat.shape[0]
    num_layers = len(params)
    dims = [(w.shape[0], w.shape[1]) for (w, _) in params]
    padded = [(_round_up(fi, 128), _round_up(fo, 128)) for (fi, fo) in dims]
    n_classes = dims[-1][1]

    np_ = _round_up(max(n, row_tile), row_tile)
    num_tiles = np_ // row_tile

    a_pad = _pad_to(a_hat, (np_, np_)).astype(jnp.bfloat16)
    h = _pad_to(features, (np_, padded[0][0])).astype(jnp.bfloat16)

    for l, ((fi, fo), (fip, fop)) in enumerate(zip(dims, padded)):
        w_pad = _pad_to(params[l][0], (fip, fop)).astype(jnp.bfloat16)
        b_pad = _pad_to(params[l][1].reshape(1, -1).astype(jnp.float32), (1, fop))
        project_first = fo <= fi
        last = l + 1 == num_layers
        out_dtype = jnp.float32 if last else jnp.bfloat16

        if project_first:
            flops = num_tiles * 2 * np_ * fip * fop + 2 * np_ * np_ * fop
        else:
            flops = 2 * np_ * np_ * fip + 2 * np_ * fip * fop
        bytes_accessed = (2 * np_ * np_ + 2 * np_ * fip + 2 * fip * fop
                          + 4 * fop + np_ * fop * (4 if last else 2))
        cost = pl.CostEstimate(flops=int(flops), transcendentals=0,
                               bytes_accessed=int(bytes_accessed))

        h = pl.pallas_call(
            _make_layer_kernel(project_first, n, row_tile),
            out_shape=jax.ShapeDtypeStruct((np_, fop), out_dtype),
            grid_spec=pl.GridSpec(
                grid=(num_tiles,),
                in_specs=[
                    # A_hat row block: streamed, keep default double-buffering.
                    pl.BlockSpec((row_tile, np_), lambda i: (i, 0)),
                    # h / W / b: grid-invariant -> single-buffered residents.
                    _spec((np_, fip), lambda i: (0, 0), single_buffered=True),
                    _spec((fip, fop), lambda i: (0, 0), single_buffered=True),
                    _spec((1, fop), lambda i: (0, 0), single_buffered=True),
                ],
                out_specs=pl.BlockSpec((row_tile, fop), lambda i: (i, 0)),
            ),
            compiler_params=pltpu.CompilerParams(
                dimension_semantics=("parallel",),   # split row tiles across TCs
                vmem_limit_bytes=_vmem_limit_bytes(),
            ),
            cost_estimate=cost,
        )(a_pad, h, w_pad, b_pad)

    return h[:n, :n_classes].astype(jnp.float32)


# ------------------------------ GCN forward -----------------------------------
def gcn_forward(a_hat, features, params, row_tile=None):
    """Full GraphConv stack.

    row_tile=None -> choose automatically; 0 -> force fused single-block path;
    a multiple of 128 -> row-tiled path with that tile size.
    """
    n = a_hat.shape[0]
    np_ = _round_up(max(n, 128), 128)
    if row_tile is None:
        max_f = max([_round_up(features.shape[1], 128)]
                    + [_round_up(w.shape[1], 128) for (w, _) in params])
        # Rough fused working set: bf16 A_hat + a few f32 activation slabs.
        fused_bytes = 2 * np_ * np_ + 6 * np_ * max_f * 4
        row_tile = 0 if fused_bytes < _vmem_limit_bytes() // 2 else 256
    if row_tile == 0:
        return _gcn_forward_fused(a_hat, features, params)
    return _gcn_forward_rowtiled(a_hat, features, params, row_tile)


# ------------------------------ parameter setup --------------------------------
def make_params(key, in_feats, n_hidden, n_classes, n_layers):
    """Xavier-uniform weights, zero biases; sizes mirror the PyTorch __init__."""
    dims = [(in_feats, n_hidden)]
    dims += [(n_hidden, n_hidden)] * (n_layers - 1)
    dims += [(n_hidden, n_classes)]
    params = []
    for (fi, fo) in dims:
        key, sub = jax.random.split(key)
        limit = (6.0 / (fi + fo)) ** 0.5
        w = jax.random.uniform(sub, (fi, fo), jnp.float32, -limit, limit)
        b = jnp.zeros((fo,), jnp.float32)
        params.append((w, b))
    return params


def normalized_adjacency(key, n):
    """Synthetic symmetric graph with self-loops, D^{-1/2}(A+I)D^{-1/2}."""
    a = (jax.random.uniform(key, (n, n)) < 0.3).astype(jnp.float32)
    a = jnp.maximum(a, a.T)
    a = jnp.maximum(a, jnp.eye(n, dtype=jnp.float32))
    deg = a.sum(axis=1)
    d_inv_sqrt = 1.0 / jnp.sqrt(deg)
    return a * d_inv_sqrt[:, None] * d_inv_sqrt[None, :]


def gcn_reference(a_hat, features, params):
    h = features
    for (w, b) in params:
        h = a_hat @ (h @ w) + b[None, :]
    return h


def _max_rel_err(x, ref):
    return float(jnp.max(jnp.abs(x - ref)) / (jnp.max(jnp.abs(ref)) + 1e-6))


# ---------------------------------- main ---------------------------------------
if __name__ == "__main__":
    key = jax.random.PRNGKey(0)
    k1, k2, k3, k4, k5, k6 = jax.random.split(key, 6)

    # dropout p is defined in the module __init__ but never applied in forward
    # -> intentionally omitted.

    # --- Test 1: small module-spec shapes -> fused single-block path.
    num_nodes, in_feats, n_hidden, n_classes, n_layers = 16, 8, 32, 4, 2
    a_hat = normalized_adjacency(k1, num_nodes)
    features = jax.random.normal(k2, (num_nodes, in_feats), jnp.float32)
    params = make_params(k3, in_feats, n_hidden, n_classes, n_layers)

    out = jax.block_until_ready(gcn_forward(a_hat, features, params))
    ref = gcn_reference(a_hat, features, params)
    assert out.shape == (num_nodes, n_classes)
    err = _max_rel_err(out, ref)
    assert err < 5e-2, f"fused path error too large: {err}"

    # --- Test 2: bigger graph with heterogeneous feature widths ->
    # row-tiled, "parallel"-row-axis path (exercises the scalable design).
    num_nodes2, in_feats2, n_hidden2, n_classes2, n_layers2 = 512, 300, 64, 7, 1
    a_hat2 = normalized_adjacency(k4, num_nodes2)
    features2 = jax.random.normal(k5, (num_nodes2, in_feats2), jnp.float32)
    params2 = make_params(k6, in_feats2, n_hidden2, n_classes2, n_layers2)

    out2 = jax.block_until_ready(
        gcn_forward(a_hat2, features2, params2, row_tile=256))
    ref2 = gcn_reference(a_hat2, features2, params2)
    assert out2.shape == (num_nodes2, n_classes2)
    err2 = _max_rel_err(out2, ref2)
    assert err2 < 5e-2, f"row-tiled path error too large: {err2}"

    print("KERNEL_OK")
</pallas_src>

<mosaic_0001>
module attributes {stable_mosaic.version = 11 : i64} {
  func.func @kernel(%arg0: i32, %arg1: memref<128x128xbf16, #tpu.memory_space<vmem>>, %arg2: memref<128x128xbf16, #tpu.memory_space<vmem>>, %arg3: memref<128x128xbf16, #tpu.memory_space<vmem>>, %arg4: memref<128x128xbf16, #tpu.memory_space<vmem>>, %arg5: memref<128x128xbf16, #tpu.memory_space<vmem>>, %arg6: memref<1x128xf32, #tpu.memory_space<vmem>>, %arg7: memref<1x128xf32, #tpu.memory_space<vmem>>, %arg8: memref<1x128xf32, #tpu.memory_space<vmem>>, %arg9: memref<128x128xf32, #tpu.memory_space<vmem>>) attributes {dimension_semantics = [#tpu.dimension_semantics<arbitrary>], iteration_bounds = array<i64: 1>, scalar_prefetch = 0 : i64, scratch_operands = 0 : i64, tpu.core_type = #tpu.core_type<tc>, window_params = [{pipeline_mode = #tpu.pipeline_mode<synchronous>, transform_indices = @transform_0, window_bounds = array<i64: 128, 128>}, {pipeline_mode = #tpu.pipeline_mode<synchronous>, transform_indices = @transform_1, window_bounds = array<i64: 128, 128>}, {pipeline_mode = #tpu.pipeline_mode<synchronous>, transform_indices = @transform_2, window_bounds = array<i64: 128, 128>}, {pipeline_mode = #tpu.pipeline_mode<synchronous>, transform_indices = @transform_3, window_bounds = array<i64: 128, 128>}, {pipeline_mode = #tpu.pipeline_mode<synchronous>, transform_indices = @transform_4, window_bounds = array<i64: 128, 128>}, {pipeline_mode = #tpu.pipeline_mode<synchronous>, transform_indices = @transform_5, window_bounds = array<i64: 1, 128>}, {pipeline_mode = #tpu.pipeline_mode<synchronous>, transform_indices = @transform_6, window_bounds = array<i64: 1, 128>}, {pipeline_mode = #tpu.pipeline_mode<synchronous>, transform_indices = @transform_7, window_bounds = array<i64: 1, 128>}, {pipeline_mode = #tpu.pipeline_mode<synchronous>, transform_indices = @transform_8, window_bounds = array<i64: 128, 128>}]} {
    %0 = tpu.iota {dimensions = array<i32: 0>} : vector<128x1xi32>
    %c16_i32 = arith.constant 16 : i32
    %1 = vector.broadcast %c16_i32 : i32 to vector<128x1xi32>
    %2 = arith.cmpi slt, %0, %1 : vector<128x1xi32>
    %c0 = arith.constant 0 : index
    %c0_0 = arith.constant 0 : index
    %3 = vector.load %arg2[%c0, %c0_0] : memref<128x128xbf16, #tpu.memory_space<vmem>>, vector<128x128xbf16>
    %c0_1 = arith.constant 0 : index
    %c0_2 = arith.constant 0 : index
    %4 = vector.load %arg3[%c0_1, %c0_2] : memref<128x128xbf16, #tpu.memory_space<vmem>>, vector<128x128xbf16>
    %c0_3 = arith.constant 0 : index
    %c0_4 = arith.constant 0 : index
    %5 = vector.load %arg1[%c0_3, %c0_4] : memref<128x128xbf16, #tpu.memory_space<vmem>>, vector<128x128xbf16>
    %cst = arith.constant dense<0.000000e+00> : vector<128x128xf32>
    %6 = tpu.matmul %5, %3, %cst {dimension_numbers = #tpu.dot_dimension_numbers<[1], [0], [0], [1], [0, 0, 1, 1], [], []>} : vector<128x128xbf16>, vector<128x128xbf16>, vector<128x128xf32> -> vector<128x128xf32>
    %7 = arith.truncf %6 : vector<128x128xf32> to vector<128x128xbf16>
    %cst_5 = arith.constant dense<0.000000e+00> : vector<128x128xf32>
    %8 = tpu.matmul %7, %4, %cst_5 {dimension_numbers = #tpu.dot_dimension_numbers<[1], [0], [0], [1], [0, 0, 1, 1], [], []>} : vector<128x128xbf16>, vector<128x128xbf16>, vector<128x128xf32> -> vector<128x128xf32>
    %c0_6 = arith.constant 0 : index
    %c0_7 = arith.constant 0 : index
    %9 = vector.load %arg6[%c0_6, %c0_7] : memref<1x128xf32, #tpu.memory_space<vmem>>, vector<1x128xf32>
    %10 = vector.broadcast %9 : vector<1x128xf32> to vector<128x128xf32>
    %11 = arith.addf %8, %10 : vector<128x128xf32>
    %cst_8 = arith.constant 0.000000e+00 : f32
    %12 = vector.shape_cast %2 : vector<128x1xi1> to vector<128x1xi1>
    %13 = vector.broadcast %12 : vector<128x1xi1> to vector<128x128xi1>
    %14 = vector.broadcast %cst_8 : f32 to vector<128x128xf32>
    %15 = arith.select %13, %11, %14 : vector<128x128xi1>, vector<128x128xf32>
    %16 = arith.truncf %15 : vector<128x128xf32> to vector<128x128xbf16>
    %c0_9 = arith.constant 0 : index
    %c0_10 = arith.constant 0 : index
    %17 = vector.load %arg4[%c0_9, %c0_10] : memref<128x128xbf16, #tpu.memory_space<vmem>>, vector<128x128xbf16>
    %cst_11 = arith.constant dense<0.000000e+00> : vector<128x128xf32>
    %18 = tpu.matmul %16, %17, %cst_11 {dimension_numbers = #tpu.dot_dimension_numbers<[1], [0], [0], [1], [0, 0, 1, 1], [], []>} : vector<128x128xbf16>, vector<128x128xbf16>, vector<128x128xf32> -> vector<128x128xf32>
    %c0_12 = arith.constant 0 : index
    %c0_13 = arith.constant 0 : index
    %19 = vector.load %arg1[%c0_12, %c0_13] : memref<128x128xbf16, #tpu.memory_space<vmem>>, vector<128x128xbf16>
    %20 = arith.truncf %18 : vector<128x128xf32> to vector<128x128xbf16>
    %cst_14 = arith.constant dense<0.000000e+00> : vector<128x128xf32>
    %21 = tpu.matmul %19, %20, %cst_14 {dimension_numbers = #tpu.dot_dimension_numbers<[1], [0], [0], [1], [0, 0, 1, 1], [], []>} : vector<128x128xbf16>, vector<128x128xbf16>, vector<128x128xf32> -> vector<128x128xf32>
    %c0_15 = arith.constant 0 : index
    %c0_16 = arith.constant 0 : index
    %22 = vector.load %arg7[%c0_15, %c0_16] : memref<1x128xf32, #tpu.memory_space<vmem>>, vector<1x128xf32>
    %23 = vector.broadcast %22 : vector<1x128xf32> to vector<128x128xf32>
    %24 = arith.addf %21, %23 : vector<128x128xf32>
    %cst_17 = arith.constant 0.000000e+00 : f32
    %25 = vector.shape_cast %2 : vector<128x1xi1> to vector<128x1xi1>
    %26 = vector.broadcast %25 : vector<128x1xi1> to vector<128x128xi1>
    %27 = vector.broadcast %cst_17 : f32 to vector<128x128xf32>
    %28 = arith.select %26, %24, %27 : vector<128x128xi1>, vector<128x128xf32>
    %29 = arith.truncf %28 : vector<128x128xf32> to vector<128x128xbf16>
    %c0_18 = arith.constant 0 : index
    %c0_19 = arith.constant 0 : index
    %30 = vector.load %arg5[%c0_18, %c0_19] : memref<128x128xbf16, #tpu.memory_space<vmem>>, vector<128x128xbf16>
    %cst_20 = arith.constant dense<0.000000e+00> : vector<128x128xf32>
    %31 = tpu.matmul %29, %30, %cst_20 {dimension_numbers = #tpu.dot_dimension_numbers<[1], [0], [0], [1], [0, 0, 1, 1], [], []>} : vector<128x128xbf16>, vector<128x128xbf16>, vector<128x128xf32> -> vector<128x128xf32>
    %c0_21 = arith.constant 0 : index
    %c0_22 = arith.constant 0 : index
    %32 = vector.load %arg1[%c0_21, %c0_22] : memref<128x128xbf16, #tpu.memory_space<vmem>>, vector<128x128xbf16>
    %33 = arith.truncf %31 : vector<128x128xf32> to vector<128x128xbf16>
    %cst_23 = arith.constant dense<0.000000e+00> : vector<128x128xf32>
    %34 = tpu.matmul %32, %33, %cst_23 {dimension_numbers = #tpu.dot_dimension_numbers<[1], [0], [0], [1], [0, 0, 1, 1], [], []>} : vector<128x128xbf16>, vector<128x128xbf16>, vector<128x128xf32> -> vector<128x128xf32>
    %c0_24 = arith.constant 0 : index
    %c0_25 = arith.constant 0 : index
    %35 = vector.load %arg8[%c0_24, %c0_25] : memref<1x128xf32, #tpu.memory_space<vmem>>, vector<1x128xf32>
    %36 = vector.broadcast %35 : vector<1x128xf32> to vector<128x128xf32>
    %37 = arith.addf %34, %36 : vector<128x128xf32>
    %cst_26 = arith.constant 0.000000e+00 : f32
    %38 = vector.shape_cast %2 : vector<128x1xi1> to vector<128x1xi1>
    %39 = vector.broadcast %38 : vector<128x1xi1> to vector<128x128xi1>
    %40 = vector.broadcast %cst_26 : f32 to vector<128x128xf32>
    %41 = arith.select %39, %37, %40 : vector<128x128xi1>, vector<128x128xf32>
    %c0_27 = arith.constant 0 : index
    %c0_28 = arith.constant 0 : index
    %42 = vector.load %arg9[%c0_27, %c0_28] : memref<128x128xf32, #tpu.memory_space<vmem>>, vector<128x128xf32>
    tpu.vector_store %arg9[%c0_27, %c0_28], %41 {strides = array<i32>} : memref<128x128xf32, #tpu.memory_space<vmem>>, vector<128x128xf32>,
    return
  }
  func.func @transform_0(%arg0: i32) -> (i32, i32) {
    %c0_i32 = arith.constant 0 : i32
    %c0_i32_0 = arith.constant 0 : i32
    %c0_i32_1 = arith.constant 0 : i32
    return %c0_i32, %c0_i32_0 : i32, i32
  }
  func.func @transform_1(%arg0: i32) -> (i32, i32) {
    %c0_i32 = arith.constant 0 : i32
    %c0_i32_0 = arith.constant 0 : i32
    %c0_i32_1 = arith.constant 0 : i32
    return %c0_i32, %c0_i32_0 : i32, i32
  }
  func.func @transform_2(%arg0: i32) -> (i32, i32) {
    %c0_i32 = arith.constant 0 : i32
    %c0_i32_0 = arith.constant 0 : i32
    %c0_i32_1 = arith.constant 0 : i32
    return %c0_i32, %c0_i32_0 : i32, i32
  }
  func.func @transform_3(%arg0: i32) -> (i32, i32) {
    %c0_i32 = arith.constant 0 : i32
    %c0_i32_0 = arith.constant 0 : i32
    %c0_i32_1 = arith.constant 0 : i32
    return %c0_i32, %c0_i32_0 : i32, i32
  }
  func.func @transform_4(%arg0: i32) -> (i32, i32) {
    %c0_i32 = arith.constant 0 : i32
    %c0_i32_0 = arith.constant 0 : i32
    %c0_i32_1 = arith.constant 0 : i32
    return %c0_i32, %c0_i32_0 : i32, i32
  }
  func.func @transform_5(%arg0: i32) -> (i32, i32) {
    %c0_i32 = arith.constant 0 : i32
    %c0_i32_0 = arith.constant 0 : i32
    %c0_i32_1 = arith.constant 0 : i32
    return %c0_i32, %c0_i32_0 : i32, i32
  }
  func.func @transform_6(%arg0: i32) -> (i32, i32) {
    %c0_i32 = arith.constant 0 : i32
    %c0_i32_0 = arith.constant 0 : i32
    %c0_i32_1 = arith.constant 0 : i32
    return %c0_i32, %c0_i32_0 : i32, i32
  }
  func.func @transform_7(%arg0: i32) -> (i32, i32) {
    %c0_i32 = arith.constant 0 : i32
    %c0_i32_0 = arith.constant 0 : i32
    %c0_i32_1 = arith.constant 0 : i32
    return %c0_i32, %c0_i32_0 : i32, i32
  }
  func.func @transform_8(%arg0: i32) -> (i32, i32) {
    %c0_i32 = arith.constant 0 : i32
    %c0_i32_0 = arith.constant 0 : i32
    %c0_i32_1 = arith.constant 0 : i32
    return %c0_i32, %c0_i32_0 : i32, i32
  }
}

</mosaic_0001>

<bundles_post_ra>
// kernel: tpu_custom_call.1
= control target key start
LH: loop header
LB: loop body
LE: loop exit
PB: predicated region body
PF: predicated region fallthrough
CT: control target
= control target key end

     0   :  { %13 = vsyncpa [#allocation3], 0  ;;  %s1874_s0 = inlined_call_operand.hbm [shape: bf16[128,128], index: 0, kind: input, shape index: {}]   ;;  %s1875_s1 = inlined_call_operand.hbm [shape: bf16[128,128], index: 1, kind: input, shape index: {}]   ;;  %s1876_s2 = inlined_call_operand.hbm [shape: bf16[128,128], index: 2, kind: input, shape index: {}]   ;;  %s1877_s3 = inlined_call_operand.hbm [shape: bf16[128,128], index: 3, kind: input, shape index: {}]   ;;  %s1878_s4 = inlined_call_operand.hbm [shape: bf16[128,128], index: 4, kind: input, shape index: {}]   ;;  %s1879_s5 = inlined_call_operand.vmem [shape: f32[1,128], index: 5, kind: input, shape index: {}]   ;;  %s1880_s6 = inlined_call_operand.vmem [shape: f32[1,128], index: 6, kind: input, shape index: {}]   ;;  %s1881_s7 = inlined_call_operand.vmem [shape: f32[1,128], index: 7, kind: input, shape index: {}]   ;;  %s1882_s8 = inlined_call_operand.hbm [shape: f32[128,128], index: 8, kind: output, shape index: {}]  }
   0x1   :  { %14 = vsyncpa [#allocation6], 0 }
   0x2   :  { %15 = vsyncpa [#allocation9], 0 }
   0x3   :  { %16 = vsyncpa [#allocation4], 0  ;;  %s1721_s27 = smov [#allocation5]   ;;  %s1722_s29 = smov [#allocation8]  }
   0x4   :  { %s34_s28 = sshll.u32 %s1721_s27, 4  ;;  %s58_s30 = sshll.u32 %s1722_s29, 4  ;;  %s35_s28 = int_to_ptr.vmem [resolvable:$true] %s34_s28  ;;  %s59_s30 = int_to_ptr.vmem [resolvable:$true] %s58_s30 }
   0x5   :  { %s1601_s9 = scalar_lea.vmem %s35_s28, 1024  ;;  %p1606_p1 = scmp.lt.s32.totalorder %s35_s28, %s35_s28 }
   0x6   :  { %p1602_p0 = scmp.ne.s32.totalorder %s35_s28, %s1601_s9  ;;  %p1607_p2 = scmp.lt.s32.totalorder %s1601_s9, %s1601_s9 }
   0x8   :  { %p1608_p3 = por %p1607_p2, %p1606_p1 }
   0xa   :  { %p1609_p4 = pnand %p1608_p3, %p1602_p0 }
   0xc   :  { %1612 = shalt.err (!%p1609_p4)
}
   0xd   :  { %s1723_s10 = smov 64   ;;  %s1724_s11 = smov 4  }
   0xe   :  { %40 = dma.hbm_to_vmem [thread:$0]  %s1875_s1, 1024, %s35_s28, [#allocation6], %s1723_s10, %s1723_s10, %s1724_s11  }
   0xf   :  { %s1621_s14 = scalar_lea.vmem %s59_s30, 1024  ;;  %p1626_p6 = scmp.lt.s32.totalorder %s59_s30, %s59_s30 }
  0x10   :  { %p1622_p5 = scmp.ne.s32.totalorder %s59_s30, %s1621_s14  ;;  %p1627_p7 = scmp.lt.s32.totalorder %s1621_s14, %s1621_s14 }
  0x12   :  { %p1628_p8 = por %p1627_p7, %p1626_p6 }
  0x14   :  { %p1629_p9 = pnand %p1628_p8, %p1622_p5 }
  0x16   :  { %1632 = shalt.err (!%p1629_p9)
}
  0x17   :  { %64 = dma.hbm_to_vmem [thread:$0]  %s1877_s3, 1024, %s59_s30, [#allocation9], %s1723_s10, %s1723_s10, %s1724_s11  }
  0x18   :  { %s1725_s17 = smov [#allocation2]   ;;  %s1726_s19 = smov [#allocation7]  }
  0x19   :  { %s22_s18 = sshll.u32 %s1725_s17, 4  ;;  %s46_s20 = sshll.u32 %s1726_s19, 4  ;;  %s23_s18 = int_to_ptr.vmem [resolvable:$true] %s22_s18  ;;  %s47_s20 = int_to_ptr.vmem [resolvable:$true] %s46_s20 }
  0x1a   :  { %s1641_s1 = scalar_lea.vmem %s23_s18, 1024  ;;  %p1646_p11 = scmp.lt.s32.totalorder %s23_s18, %s23_s18 }
  0x1b   :  { %p1642_p10 = scmp.ne.s32.totalorder %s23_s18, %s1641_s1  ;;  %p1647_p12 = scmp.lt.s32.totalorder %s1641_s1, %s1641_s1 }
  0x1d   :  { %p1648_p13 = por %p1647_p12, %p1646_p11 }
  0x1f   :  { %p1649_p0 = pnand %p1648_p13, %p1642_p10 }
  0x21   :  { %1652 = shalt.err (!%p1649_p0)
}
  0x22   :  { %28 = dma.hbm_to_vmem [thread:$0]  %s1874_s0, 1024, %s23_s18, [#allocation3], %s1723_s10, %s1723_s10, %s1724_s11  }
  0x23   :  { %s1661_s3 = scalar_lea.vmem %s47_s20, 1024  ;;  %p1666_p2 = scmp.lt.s32.totalorder %s47_s20, %s47_s20 }
  0x24   :  { %p1662_p1 = scmp.ne.s32.totalorder %s47_s20, %s1661_s3  ;;  %p1667_p3 = scmp.lt.s32.totalorder %s1661_s3, %s1661_s3 }
  0x26   :  { %p1668_p4 = por %p1667_p3, %p1666_p2 }
  0x28   :  { %p1669_p5 = pnand %p1668_p4, %p1662_p1 }
  0x2a   :  { %1672 = shalt.err (!%p1669_p5)
}
  0x2b   :  { %52 = dma.hbm_to_vmem [thread:$0]  %s1876_s2, 1024, %s47_s20, [#allocation6], %s1723_s10, %s1723_s10, %s1724_s11  }
  0x2c   :  { %s1727_s25 = smov [#allocation10]  }
  0x2d   :  { %s70_s26 = sshll.u32 %s1727_s25, 4  ;;  %s71_s26 = int_to_ptr.vmem [resolvable:$true] %s70_s26 }
  0x2e   :  { %s1681_s27 = scalar_lea.vmem %s71_s26, 1024  ;;  %p1686_p7 = scmp.lt.s32.totalorder %s71_s26, %s71_s26 }
  0x2f   :  { %p1682_p6 = scmp.ne.s32.totalorder %s71_s26, %s1681_s27  ;;  %p1687_p8 = scmp.lt.s32.totalorder %s1681_s27, %s1681_s27 }
  0x31   :  { %p1688_p9 = por %p1687_p8, %p1686_p7 }
  0x33   :  { %p1689_p10 = pnand %p1688_p9, %p1682_p6 }
  0x35   :  { %1692 = shalt.err (!%p1689_p10)
}
  0x36   :  { %76 = dma.hbm_to_vmem [thread:$0]  %s1878_s4, 1024, %s71_s26, [#allocation9], %s1723_s10, %s1723_s10, %s1724_s11  }
  0x37   :  { %1713 = dma.done.wait [#allocation3], 1024  }
  0x38   :  { %1714 = vsyncadd [#allocation3], 4294966272 }
  0x39   :  { %1715 = dma.done.wait [#allocation6], 2048  }
  0x3a   :  { %1716 = vsyncadd [#allocation6], 4294965248 }
  0x3b   :  { %1717 = dma.done.wait [#allocation9], 2048  }
  0x3c   :  { %1718 = vsyncadd [#allocation9], 4294965248  ;;  %v1553_v0 = vld [vmem:[#allocation5 + $0x38] sm:$0xff]   ;;  %v1554_v1 = vld [vmem:[#allocation5 + $0x30] sm:$0xff]   ;;  %s1730_s9 = smov [#allocation11]  }
  0x3d   :  { %1349 = vmatprep.subr.bf16.mxu0 %v1553_v0  ;;  %v1555_v2 = vld [vmem:[#allocation5 + $0x28] sm:$0xff]   ;;  %v1556_v3 = vld [vmem:[#allocation5 + $0x20] sm:$0xff]   ;;  %v1563_v5 = vld [vmem:[#allocation7 + $0x38] sm:$0xff]   ;;  %s1196_s10 = sshll.u32 %s1730_s9, 4  ;;  %s1197_s10 = int_to_ptr.vmem [resolvable:$true] %s1196_s10 }
  0x3e   :  { %1350 = vmatpush3.bf16.msra.mxu0 %v1553_v0  ;;  %v1808_v4 = vld [vmem:[#allocation2] sm:$0xff]   ;;  %v1564_v6 = vld [vmem:[#allocation7 + $0x30] sm:$0xff]   ;;  %v1557_v7 = vld [vmem:[#allocation5 + $0x18] sm:$0xff]   ;;  %1381 = vmatprep.subr.bf16.mxu1 %v1563_v5  ;;  %v1728_v0 = vmov 0.0|0.0   ;;  %s1693_s11 = scalar_lea.vmem %s1197_s10, 2048  ;;  %p1698_p12 = scmp.lt.s32.totalorder %s1197_s10, %s1197_s10 }
  0x3f   :  { %1351 = vmatprep.subr.bf16.mxu0 %v1554_v1  ;;  %1365 = vmatprep.mubr.bf16.mxu0 %v1808_v4  ;;  %v1565_v8 = vld [vmem:[#allocation7 + $0x28] sm:$0xff]   ;;  %v1558_v9 = vld [vmem:[#allocation5 + $0x10] sm:$0xff]   ;;  %v1566_v10 = vld [vmem:[#allocation7 + $0x20] sm:$0xff]   ;;  %p1694_p11 = scmp.ne.s32.totalorder %s1197_s10, %s1693_s11  ;;  %p1699_p13 = scmp.lt.s32.totalorder %s1693_s11, %s1693_s11 }
  0x40   :  { %1382 = vmatpush3.bf16.msra.mxu1 %v1563_v5  ;;  %v1559_v11 = vld [vmem:[#allocation5 + $0x8] sm:$0xff]   ;;  %v1567_v12 = vld [vmem:[#allocation7 + $0x18] sm:$0xff]   ;;  %v1560_v13 = vld [vmem:[#allocation5] sm:$0xff]  }
  0x41   :  { %1383 = vmatprep.subr.bf16.mxu1 %v1564_v6  ;;  %v1568_v14 = vld [vmem:[#allocation7 + $0x10] sm:$0xff]   ;;  %v1811_v15 = vld [vmem:[#allocation2 + $0x8] sm:$0xff]   ;;  %v1570_v17 = vld [vmem:[#allocation7] sm:$0xff]   ;;  %p1700_p0 = por %p1699_p13, %p1698_p12 }
  0x42   :  { %1352 = vmatpush3.bf16.msra.mxu0 %v1554_v1  ;;  %v1569_v16 = vld [vmem:[#allocation7 + $0x8] sm:$0xff]   ;;  %v1814_v18 = vld [vmem:[#allocation2 + $0x10] sm:$0xff]   ;;  %v1816_v19 = vld [vmem:[#allocation2 + $0x18] sm:$0xff]  }
  0x43   :  { %1353 = vmatprep.subr.bf16.mxu0 %v1555_v2  ;;  %v1573_v20 = vld [vmem:[#allocation8 + $0x38] sm:$0xff]   ;;  %v1818_v21 = vld [vmem:[#allocation2 + $0x20] sm:$0xff]   ;;  %v1576_v22 = vld [vmem:[#allocation8 + $0x30] sm:$0xff]   ;;  %p1701_p1 = pnand %p1700_p0, %p1694_p11 }
  0x44   :  { %1384 = vmatpush3.bf16.msra.mxu1 %v1564_v6  ;;  %v1577_v23 = vld [vmem:[#allocation8 + $0x28] sm:$0xff]   ;;  %v1825_v25 = vld [vmem:[#allocation2 + $0x30] sm:$0xff]   ;;  %v1580_v26 = vld [vmem:[#allocation8 + $0x20] sm:$0xff]  }
  0x45   :  { %1385 = vmatprep.subr.bf16.mxu1 %v1565_v8  ;;  %v1823_v24 = vld [vmem:[#allocation2 + $0x28] sm:$0xff]   ;;  %v1581_v27 = vld [vmem:[#allocation8 + $0x18] sm:$0xff]   ;;  %v1582_v35 = vld [vmem:[#allocation8 + $0x10] sm:$0xff]  }
  0x46   :  { %1354 = vmatpush3.bf16.msra.mxu0 %v1555_v2  ;;  %v1829_v28 = vld [vmem:[#allocation2 + $0x38] sm:$0xff]   ;;  %v1583_v36 = vld [vmem:[#allocation8 + $0x8] sm:$0xff]   ;;  %v1584_v37 = vld [vmem:[#allocation8] sm:$0xff]  }
  0x47   :  { %1355 = vmatprep.subr.bf16.mxu0 %v1556_v3  ;;  %v1226_v58 = vld [vmem:[%s1879_s5] ss:$0 sm:$0xff] }
  0x48   :  { %1386 = vmatpush3.bf16.msra.mxu1 %v1565_v8 }
  0x49   :  { %1387 = vmatprep.subr.bf16.mxu1 %v1566_v10 }
  0x4a   :  { %1356 = vmatpush3.bf16.msra.mxu0 %v1556_v3 }
  0x4b   :  { %1357 = vmatprep.subr.bf16.mxu0 %v1557_v7 }
  0x4c   :  { %1388 = vmatpush3.bf16.msra.mxu1 %v1566_v10 }
  0x4d   :  { %1389 = vmatprep.subr.bf16.mxu1 %v1567_v12 }
  0x4e   :  { %1358 = vmatpush3.bf16.msra.mxu0 %v1557_v7 }
  0x4f   :  { %1359 = vmatprep.subr.bf16.mxu0 %v1558_v9 }
  0x50   :  { %1390 = vmatpush3.bf16.msra.mxu1 %v1567_v12 }
  0x51   :  { %1391 = vmatprep.subr.bf16.mxu1 %v1568_v14 }
  0x52   :  { %1360 = vmatpush3.bf16.msra.mxu0 %v1558_v9 }
  0x53   :  { %1361 = vmatprep.subr.bf16.mxu0 %v1559_v11 }
  0x54   :  { %1392 = vmatpush3.bf16.msra.mxu1 %v1568_v14  ;;  %v1585_v14 = vld [vmem:[#allocation10 + $0x38] sm:$0xff]  }
  0x55   :  { %1393 = vmatprep.subr.bf16.mxu1 %v1569_v16 }
  0x56   :  { %1362 = vmatpush3.bf16.msra.mxu0 %v1559_v11 }
  0x57   :  { %1363 = vmatprep.subr.bf16.mxu0 %v1560_v13 }
  0x58   :  { %1394 = vmatpush3.bf16.msra.mxu1 %v1569_v16  ;;  %v1586_v16 = vld [vmem:[#allocation10 + $0x30] sm:$0xff]  }
  0x59   :  { %1395 = vmatprep.subr.bf16.mxu1 %v1570_v17 }
  0x5a   :  { %1364 = vmatpush3.bf16.msra.mxu0 %v1560_v13 }
  0x5b   :  { %1413 = vmatprep.subr.bf16.mxu0 %v1573_v20 }
  0x5c   :  { %1396 = vmatpush3.bf16.msra.mxu1 %v1570_v17  ;;  %v1587_v17 = vld [vmem:[#allocation10 + $0x28] sm:$0xff]  }
  0x5d   :  { %1366 = vmatmul.mubr.bf16.vlgmr.msra.gmra.mxu0 %v1811_v15 }
  0x5e   :  { %1369 = vmatprep.mubr.bf16.mxu0 %v1814_v18  ;;  %1414 = vmatpush3.bf16.msra.mxu0 %v1573_v20  ;;  %v1588_v20 = vld [vmem:[#allocation10 + $0x20] sm:$0xff]  }
  0x5f   :  { %1415 = vmatprep.subr.bf16.mxu0 %v1576_v22 }
  0x62   :  { %1416 = vmatpush3.bf16.msra.mxu0 %v1576_v22  ;;  %v1589_v22 = vld [vmem:[#allocation10 + $0x18] sm:$0xff]  }
  0x63   :  { %1417 = vmatprep.subr.bf16.mxu0 %v1577_v23 }
  0x65   :  { %1370 = vmatmul.mubr.bf16.gmra.mxu0 %v1816_v19 }
  0x66   :  { %1373 = vmatprep.mubr.bf16.mxu0 %v1818_v21  ;;  %1418 = vmatpush3.bf16.msra.mxu0 %v1577_v23 }
  0x67   :  { %1419 = vmatprep.subr.bf16.mxu0 %v1580_v26 }
  0x6a   :  { %1420 = vmatpush3.bf16.msra.mxu0 %v1580_v26 }
  0x6b   :  { %1421 = vmatprep.subr.bf16.mxu0 %v1581_v27 }
  0x6d   :  { %1374 = vmatmul.mubr.bf16.gmra.mxu0 %v1823_v24 }
  0x6e   :  { %1377 = vmatprep.mubr.bf16.mxu0 %v1825_v25  ;;  %1422 = vmatpush3.bf16.msra.mxu0 %v1581_v27 }
  0x6f   :  { %1423 = vmatprep.subr.bf16.mxu0 %v1582_v35 }
  0x72   :  { %1424 = vmatpush3.bf16.msra.mxu0 %v1582_v35 }
  0x73   :  { %1425 = vmatprep.subr.bf16.mxu0 %v1583_v36 }
  0x75   :  { %1378 = vmatmul.mubr.bf16.gmra.mxu0 %v1829_v28 }
  0x76   :  { %1426 = vmatpush3.bf16.msra.mxu0 %v1583_v36 }
  0x77   :  { %1427 = vmatprep.subr.bf16.mxu0 %v1584_v37 }
  0x7a   :  { %1428 = vmatpush3.bf16.msra.mxu0 %v1584_v37 }
  0x7b   :  { %1477 = vmatprep.subr.bf16.mxu0 %v1585_v14 }
 0x11d   :  { %v1367_v29 = vpop.f32.mrf.mxu0 }
 0x11f   :  { %v310_v30 = vpop.f32.mrf.mxu0 }
 0x121   :  { %v1368_v31 = vpop.f32.mrf.mxu0 }
 0x122   :  { %v374_v34 = vpack.c.bf16 %v1368_v31, %v1367_v29 }
 0x123   :  { %v313_v32 = vpop.f32.mrf.mxu0 }
 0x124   :  { %v373_v33 = vpack.c.bf16 %v313_v32, %v310_v30 }
 0x125   :  { %v1371_v38 = vpop.f32.mrf.mxu0 }
 0x126   :  { %1397 = vmatprep.mubr.bf16.mxu1 %v373_v33 }
 0x127   :  { %1398 = vmatmul.mubr.bf16.vlgmr.msra.gmra.mxu1 %v374_v34  ;;  %v326_v39 = vpop.f32.mrf.mxu0 }
 0x129   :  { %v1372_v40 = vpop.f32.mrf.mxu0 }
 0x12a   :  { %v376_v41 = vpack.c.bf16 %v1372_v40, %v1371_v38 }
 0x12b   :  { %v329_v42 = vpop.f32.mrf.mxu0 }
 0x12c   :  { %v375_v43 = vpack.c.bf16 %v329_v42, %v326_v39 }
 0x12d   :  { %v1375_v44 = vpop.f32.mrf.mxu0 }
 0x12e   :  { %1401 = vmatprep.mubr.bf16.mxu1 %v375_v43 }
 0x12f   :  { %v342_v45 = vpop.f32.mrf.mxu0  ;;  %1402 = vmatmul.mubr.bf16.gmra.mxu1 %v376_v41 }
 0x131   :  { %v1376_v46 = vpop.f32.mrf.mxu0 }
 0x132   :  { %v378_v47 = vpack.c.bf16 %v1376_v46, %v1375_v44 }
 0x133   :  { %v345_v48 = vpop.f32.mrf.mxu0 }
 0x134   :  { %v377_v49 = vpack.c.bf16 %v345_v48, %v342_v45 }
 0x135   :  { %v1379_v50 = vpop.f32.mrf.mxu0 }
 0x136   :  { %1405 = vmatprep.mubr.bf16.mxu1 %v377_v49 }
 0x137   :  { %v358_v51 = vpop.f32.mrf.mxu0  ;;  %1406 = vmatmul.mubr.bf16.gmra.mxu1 %v378_v47 }
 0x139   :  { %v1380_v52 = vpop.f32.mrf.mxu0 }
 0x13a   :  { %v380_v53 = vpack.c.bf16 %v1380_v52, %v1379_v50  ;;  %v1590_v50 = vld [vmem:[#allocation10 + $0x10] sm:$0xff]   ;;  %v1592_v52 = vld [vmem:[#allocation10] sm:$0xff]  }
 0x13b   :  { %v361_v54 = vpop.f32.mrf.mxu0 }
 0x13c   :  { %v379_v55 = vpack.c.bf16 %v361_v54, %v358_v51  ;;  %v1591_v51 = vld [vmem:[#allocation10 + $0x8] sm:$0xff]  }
 0x13e   :  { %1409 = vmatprep.mubr.bf16.mxu1 %v379_v55  ;;  %v1243_v55 = vld [vmem:[%s1880_s6] ss:$0 sm:$0xff] }
 0x13f   :  { %1410 = vmatmul.mubr.bf16.gmra.mxu1 %v380_v53 }
 0x140   :  { %1461 = vmatprep.mubr.bf16.mxu1 %v1808_v4 }
 0x1e7   :  { %v1399_v56 = vpop.f32.mrf.mxu1 }
 0x1e9   :  { %v470_v57 = vpop.f32.mrf.mxu1 }
 0x1ea   :  { %v471_v61 = vadd.f32 %v1226_v58, %v470_v57 }
 0x1eb   :  { %v1400_v59 = vpop.f32.mrf.mxu1 }
 0x1ed   :  { %v473_v60 = vpop.f32.mrf.mxu1 }
 0x1ee   :  { %v474_v62 = vadd.f32 %v1226_v58, %v473_v60 }
 0x1ef   :  { %v1403_v1 = vpop.f32.mrf.mxu1 }
 0x1f0   :  { %v581_v63 = vpack.c.bf16 %v474_v62, %v471_v61 }
 0x1f1   :  { %v486_v2 = vpop.f32.mrf.mxu1 }
 0x1f2   :  { %1429 = vmatprep.mubr.bf16.mxu0 %v581_v63 }
 0x1f3   :  { %1430 = vmatmul.mubr.bf16.vlgmr.msra.gmra.mxu0 %v1728_v0  ;;  %v1404_v3 = vpop.f32.mrf.mxu1 }
 0x1f4   :  { %1433 = vmatprep.mubr.bf16.mxu0 %v1728_v0  ;;  %1478 = vmatpush3.bf16.msra.mxu0 %v1585_v14 }
 0x1f5   :  { %v489_v5 = vpop.f32.mrf.mxu1  ;;  %1479 = vmatprep.subr.bf16.mxu0 %v1586_v16 }
 0x1f7   :  { %v1407_v6 = vpop.f32.mrf.mxu1 }
 0x1f8   :  { %1480 = vmatpush3.bf16.msra.mxu0 %v1586_v16 }
 0x1f9   :  { %v502_v7 = vpop.f32.mrf.mxu1  ;;  %1481 = vmatprep.subr.bf16.mxu0 %v1587_v17 }
 0x1fb   :  { %1434 = vmatmul.mubr.bf16.gmra.mxu0 %v1728_v0  ;;  %v1408_v8 = vpop.f32.mrf.mxu1 }
 0x1fc   :  { %1437 = vmatprep.mubr.bf16.mxu0 %v1728_v0  ;;  %1482 = vmatpush3.bf16.msra.mxu0 %v1587_v17 }
 0x1fd   :  { %v505_v9 = vpop.f32.mrf.mxu1  ;;  %1483 = vmatprep.subr.bf16.mxu0 %v1588_v20 }
 0x1ff   :  { %v1411_v10 = vpop.f32.mrf.mxu1 }
 0x200   :  { %1484 = vmatpush3.bf16.msra.mxu0 %v1588_v20 }
 0x201   :  { %v518_v11 = vpop.f32.mrf.mxu1  ;;  %1485 = vmatprep.subr.bf16.mxu0 %v1589_v22 }
 0x203   :  { %1438 = vmatmul.mubr.bf16.gmra.mxu0 %v1728_v0  ;;  %v1412_v12 = vpop.f32.mrf.mxu1 }
 0x204   :  { %1441 = vmatprep.mubr.bf16.mxu0 %v1728_v0  ;;  %1486 = vmatpush3.bf16.msra.mxu0 %v1589_v22 }
 0x205   :  { %v521_v13 = vpop.f32.mrf.mxu1  ;;  %1487 = vmatprep.subr.bf16.mxu0 %v1590_v50 }
 0x208   :  { %1488 = vmatpush3.bf16.msra.mxu0 %v1590_v50 }
 0x209   :  { %1489 = vmatprep.subr.bf16.mxu0 %v1591_v51 }
 0x20b   :  { %1442 = vmatmul.mubr.bf16.gmra.mxu0 %v1728_v0 }
 0x20c   :  { %1490 = vmatpush3.bf16.msra.mxu0 %v1591_v51 }
 0x20d   :  { %1491 = vmatprep.subr.bf16.mxu0 %v1592_v52 }
 0x210   :  { %1492 = vmatpush3.bf16.msra.mxu0 %v1592_v52 }
 0x2b3   :  { %v1431_v23 = vpop.f32.mrf.mxu0 }
 0x2b5   :  { %v687_v26 = vpop.f32.mrf.mxu0 }
 0x2b7   :  { %v1432_v27 = vpop.f32.mrf.mxu0 }
 0x2b8   :  { %v751_v48 = vpack.c.bf16 %v1432_v27, %v1431_v23 }
 0x2b9   :  { %v690_v29 = vpop.f32.mrf.mxu0 }
 0x2ba   :  { %v750_v49 = vpack.c.bf16 %v690_v29, %v687_v26 }
 0x2bb   :  { %v1435_v30 = vpop.f32.mrf.mxu0 }
 0x2bd   :  { %v703_v31 = vpop.f32.mrf.mxu0 }
 0x2bf   :  { %v1436_v32 = vpop.f32.mrf.mxu0 }
 0x2c0   :  { %v753_v46 = vpack.c.bf16 %v1436_v32, %v1435_v30 }
 0x2c1   :  { %v706_v33 = vpop.f32.mrf.mxu0 }
 0x2c2   :  { %v752_v47 = vpack.c.bf16 %v706_v33, %v703_v31 }
 0x2c3   :  { %v1439_v34 = vpop.f32.mrf.mxu0 }
 0x2c5   :  { %v719_v35 = vpop.f32.mrf.mxu0 }
 0x2c7   :  { %v1440_v36 = vpop.f32.mrf.mxu0 }
 0x2c8   :  { %v755_v44 = vpack.c.bf16 %v1440_v36, %v1439_v34 }
 0x2c9   :  { %v722_v37 = vpop.f32.mrf.mxu0 }
 0x2ca   :  { %v754_v45 = vpack.c.bf16 %v722_v37, %v719_v35 }
 0x2cb   :  { %v1443_v38 = vpop.f32.mrf.mxu0 }
 0x2cd   :  { %v735_v39 = vpop.f32.mrf.mxu0 }
 0x2cf   :  { %v1444_v40 = vpop.f32.mrf.mxu0 }
 0x2d0   :  { %v757_v41 = vpack.c.bf16 %v1444_v40, %v1443_v38  ;;  %v1729_v40 = vmov 0.0  }
 0x2d1   :  { %v738_v42 = vpop.f32.mrf.mxu0  ;;  %1177 = vst [vmem:[#allocation11 + $0x10] sm:$0xff] %v1729_v40  ;;  %1178 = vst [vmem:[#allocation11 + $0x18] sm:$0xff] %v1729_v40 }
 0x2d2   :  { %v756_v43 = vpack.c.bf16 %v738_v42, %v735_v39  ;;  %1445 = vmatprep.subr.bf16.mxu1 %v757_v41  ;;  %1179 = vst [vmem:[#allocation11 + $0x20] sm:$0xff] %v1729_v40  ;;  %1180 = vst [vmem:[#allocation11 + $0x28] sm:$0xff] %v1729_v40 }
 0x2d3   :  { %1446 = vmatpush3.bf16.msra.mxu1 %v757_v41  ;;  %1181 = vst [vmem:[#allocation11 + $0x30] sm:$0xff] %v1729_v40  ;;  %1182 = vst [vmem:[#allocation11 + $0x38] sm:$0xff] %v1729_v40 }
 0x2d4   :  { %1447 = vmatprep.subr.bf16.mxu1 %v756_v43  ;;  %1183 = vst [vmem:[#allocation11 + $0x40] sm:$0xff] %v1729_v40  ;;  %1184 = vst [vmem:[#allocation11 + $0x48] sm:$0xff] %v1729_v40 }
 0x2d5   :  { %1185 = vst [vmem:[#allocation11 + $0x50] sm:$0xff] %v1729_v40  ;;  %1186 = vst [vmem:[#allocation11 + $0x58] sm:$0xff] %v1729_v40 }
 0x2d6   :  { %1187 = vst [vmem:[#allocation11 + $0x60] sm:$0xff] %v1729_v40  ;;  %1188 = vst [vmem:[#allocation11 + $0x68] sm:$0xff] %v1729_v40 }
 0x2d7   :  { %1448 = vmatpush3.bf16.msra.mxu1 %v756_v43  ;;  %1189 = vst [vmem:[#allocation11 + $0x70] sm:$0xff] %v1729_v40  ;;  %1190 = vst [vmem:[#allocation11 + $0x78] sm:$0xff] %v1729_v40 }
 0x2d8   :  { %1449 = vmatprep.subr.bf16.mxu1 %v755_v44 }
 0x2db   :  { %1450 = vmatpush3.bf16.msra.mxu1 %v755_v44 }
 0x2dc   :  { %1451 = vmatprep.subr.bf16.mxu1 %v754_v45 }
 0x2df   :  { %1452 = vmatpush3.bf16.msra.mxu1 %v754_v45 }
 0x2e0   :  { %1453 = vmatprep.subr.bf16.mxu1 %v753_v46 }
 0x2e3   :  { %1454 = vmatpush3.bf16.msra.mxu1 %v753_v46 }
 0x2e4   :  { %1455 = vmatprep.subr.bf16.mxu1 %v752_v47 }
 0x2e7   :  { %1456 = vmatpush3.bf16.msra.mxu1 %v752_v47 }
 0x2e8   :  { %1457 = vmatprep.subr.bf16.mxu1 %v751_v48 }
 0x2eb   :  { %1458 = vmatpush3.bf16.msra.mxu1 %v751_v48 }
 0x2ec   :  { %1459 = vmatprep.subr.bf16.mxu1 %v750_v49 }
 0x2ef   :  { %1460 = vmatpush3.bf16.msra.mxu1 %v750_v49 }
 0x2f2   :  { %1462 = vmatmul.mubr.bf16.vlgmr.msra.gmra.mxu1 %v1811_v15 }
 0x2f3   :  { %1465 = vmatprep.mubr.bf16.mxu1 %v1814_v18 }
 0x2fa   :  { %1466 = vmatmul.mubr.bf16.gmra.mxu1 %v1816_v19 }
 0x2fb   :  { %1469 = vmatprep.mubr.bf16.mxu1 %v1818_v21 }
 0x302   :  { %1470 = vmatmul.mubr.bf16.gmra.mxu1 %v1823_v24 }
 0x303   :  { %1473 = vmatprep.mubr.bf16.mxu1 %v1825_v25 }
 0x30a   :  { %1474 = vmatmul.mubr.bf16.gmra.mxu1 %v1829_v28 }
 0x30b   :  { %1525 = vmatprep.mubr.bf16.mxu1 %v1808_v4 }
 0x3b2   :  { %v1463_v53 = vpop.f32.mrf.mxu1 }
 0x3b4   :  { %v799_v54 = vpop.f32.mrf.mxu1 }
 0x3b5   :  { %v800_v58 = vadd.f32 %v1243_v55, %v799_v54 }
 0x3b6   :  { %v1464_v56 = vpop.f32.mrf.mxu1 }
 0x3b8   :  { %v802_v57 = vpop.f32.mrf.mxu1 }
 0x3b9   :  { %v803_v59 = vadd.f32 %v1243_v55, %v802_v57 }
 0x3ba   :  { %v1467_v4 = vpop.f32.mrf.mxu1 }
 0x3bb   :  { %v878_v60 = vpack.c.bf16 %v803_v59, %v800_v58 }
 0x3bc   :  { %v815_v61 = vpop.f32.mrf.mxu1 }
 0x3bd   :  { %1493 = vmatprep.mubr.bf16.mxu0 %v878_v60 }
 0x3be   :  { %1494 = vmatmul.mubr.bf16.vlgmr.msra.gmra.mxu0 %v1728_v0  ;;  %v1468_v62 = vpop.f32.mrf.mxu1 }
 0x3bf   :  { %1497 = vmatprep.mubr.bf16.mxu0 %v1728_v0 }
 0x3c0   :  { %v818_v63 = vpop.f32.mrf.mxu1 }
 0x3c2   :  { %v1471_v1 = vpop.f32.mrf.mxu1 }
 0x3c4   :  { %v831_v2 = vpop.f32.mrf.mxu1 }
 0x3c6   :  { %1498 = vmatmul.mubr.bf16.gmra.mxu0 %v1728_v0  ;;  %v1472_v3 = vpop.f32.mrf.mxu1 }
 0x3c7   :  { %1501 = vmatprep.mubr.bf16.mxu0 %v1728_v0 }
 0x3c8   :  { %v834_v5 = vpop.f32.mrf.mxu1 }
 0x3ca   :  { %v1475_v6 = vpop.f32.mrf.mxu1 }
 0x3cc   :  { %v847_v7 = vpop.f32.mrf.mxu1 }
 0x3ce   :  { %1502 = vmatmul.mubr.bf16.gmra.mxu0 %v1728_v0  ;;  %v1476_v8 = vpop.f32.mrf.mxu1 }
 0x3cf   :  { %1505 = vmatprep.mubr.bf16.mxu0 %v1728_v0 }
 0x3d0   :  { %v850_v9 = vpop.f32.mrf.mxu1 }
 0x3d6   :  { %1506 = vmatmul.mubr.bf16.gmra.mxu0 %v1728_v0 }
 0x47e   :  { %v1495_v10 = vpop.f32.mrf.mxu0 }
 0x480   :  { %v984_v11 = vpop.f32.mrf.mxu0 }
 0x482   :  { %v1496_v12 = vpop.f32.mrf.mxu0 }
 0x483   :  { %v1048_v38 = vpack.c.bf16 %v1496_v12, %v1495_v10 }
 0x484   :  { %v987_v13 = vpop.f32.mrf.mxu0 }
 0x485   :  { %v1047_v39 = vpack.c.bf16 %v987_v13, %v984_v11 }
 0x486   :  { %v1499_v14 = vpop.f32.mrf.mxu0 }
 0x488   :  { %v1000_v16 = vpop.f32.mrf.mxu0 }
 0x48a   :  { %v1500_v17 = vpop.f32.mrf.mxu0 }
 0x48b   :  { %v1050_v36 = vpack.c.bf16 %v1500_v17, %v1499_v14 }
 0x48c   :  { %v1003_v20 = vpop.f32.mrf.mxu0 }
 0x48d   :  { %v1049_v37 = vpack.c.bf16 %v1003_v20, %v1000_v16 }
 0x48e   :  { %v1503_v22 = vpop.f32.mrf.mxu0 }
 0x490   :  { %v1016_v23 = vpop.f32.mrf.mxu0 }
 0x492   :  { %v1504_v26 = vpop.f32.mrf.mxu0 }
 0x493   :  { %v1052_v0 = vpack.c.bf16 %v1504_v26, %v1503_v22 }
 0x494   :  { %v1019_v27 = vpop.f32.mrf.mxu0 }
 0x495   :  { %v1051_v35 = vpack.c.bf16 %v1019_v27, %v1016_v23 }
 0x496   :  { %v1507_v29 = vpop.f32.mrf.mxu0 }
 0x498   :  { %v1032_v30 = vpop.f32.mrf.mxu0 }
 0x49a   :  { %v1508_v31 = vpop.f32.mrf.mxu0 }
 0x49b   :  { %v1054_v32 = vpack.c.bf16 %v1508_v31, %v1507_v29 }
 0x49c   :  { %v1035_v33 = vpop.f32.mrf.mxu0 }
 0x49d   :  { %v1053_v34 = vpack.c.bf16 %v1035_v33, %v1032_v30  ;;  %1509 = vmatprep.subr.bf16.mxu1 %v1054_v32 }
 0x49e   :  { %1510 = vmatpush3.bf16.msra.mxu1 %v1054_v32 }
 0x49f   :  { %1511 = vmatprep.subr.bf16.mxu1 %v1053_v34 }
 0x4a2   :  { %1512 = vmatpush3.bf16.msra.mxu1 %v1053_v34 }
 0x4a3   :  { %1513 = vmatprep.subr.bf16.mxu1 %v1052_v0 }
 0x4a6   :  { %1514 = vmatpush3.bf16.msra.mxu1 %v1052_v0 }
 0x4a7   :  { %1515 = vmatprep.subr.bf16.mxu1 %v1051_v35 }
 0x4aa   :  { %1516 = vmatpush3.bf16.msra.mxu1 %v1051_v35 }
 0x4ab   :  { %1517 = vmatprep.subr.bf16.mxu1 %v1050_v36 }
 0x4ae   :  { %1518 = vmatpush3.bf16.msra.mxu1 %v1050_v36 }
 0x4af   :  { %1519 = vmatprep.subr.bf16.mxu1 %v1049_v37 }
 0x4b2   :  { %1520 = vmatpush3.bf16.msra.mxu1 %v1049_v37 }
 0x4b3   :  { %1521 = vmatprep.subr.bf16.mxu1 %v1048_v38 }
 0x4b6   :  { %1522 = vmatpush3.bf16.msra.mxu1 %v1048_v38 }
 0x4b7   :  { %1523 = vmatprep.subr.bf16.mxu1 %v1047_v39 }
 0x4ba   :  { %1524 = vmatpush3.bf16.msra.mxu1 %v1047_v39 }
 0x4bd   :  { %1526 = vmatmul.mubr.bf16.vlgmr.msra.gmra.mxu1 %v1811_v15 }
 0x4be   :  { %1529 = vmatprep.mubr.bf16.mxu1 %v1814_v18  ;;  %v1252_v18 = vld [vmem:[%s1881_s7] ss:$0 sm:$0xff] }
 0x4c5   :  { %1530 = vmatmul.mubr.bf16.gmra.mxu1 %v1816_v19 }
 0x4c6   :  { %1533 = vmatprep.mubr.bf16.mxu1 %v1818_v21 }
 0x4cd   :  { %1534 = vmatmul.mubr.bf16.gmra.mxu1 %v1823_v24 }
 0x4ce   :  { %1537 = vmatprep.mubr.bf16.mxu1 %v1825_v25 }
 0x4d5   :  { %1538 = vmatmul.mubr.bf16.gmra.mxu1 %v1829_v28 }
 0x57d   :  { %v1527_v15 = vpop.f32.mrf.mxu1 }
 0x57f   :  { %v1096_v19 = vpop.f32.mrf.mxu1 }
 0x580   :  { %v1097_v21 = vadd.f32 %v1252_v18, %v1096_v19 }
 0x581   :  { %v1528_v24 = vpop.f32.mrf.mxu1 }
 0x582   :  { %1175 = vst [vmem:[#allocation11] sm:$0xff] %v1097_v21 }
 0x583   :  { %v1099_v25 = vpop.f32.mrf.mxu1 }
 0x584   :  { %v1100_v28 = vadd.f32 %v1252_v18, %v1099_v25 }
 0x585   :  { %v1531_v41 = vpop.f32.mrf.mxu1 }
 0x586   :  { %1176 = vst [vmem:[#allocation11 + $0x8] sm:$0xff] %v1100_v28 }
 0x587   :  { %v1112_v42 = vpop.f32.mrf.mxu1 }
 0x588   :  { %1704 = shalt.err (!%p1701_p1)
}
 0x589   :  { %s1731_s7 = smov 128   ;;  %s1732_s12 = smov 8   ;;  %v1532_v43 = vpop.f32.mrf.mxu1 }
 0x58a   :  { %1202 = dma.vmem_to_hbm [thread:$0]  %s1197_s10, 2048, %s1882_s8, [#allocation4], %s1731_s7, %s1731_s7, %s1732_s12  }
 0x58b   :  { %v1115_v44 = vpop.f32.mrf.mxu1 }
 0x58d   :  { %v1535_v45 = vpop.f32.mrf.mxu1 }
 0x58f   :  { %v1128_v46 = vpop.f32.mrf.mxu1 }
 0x591   :  { %v1536_v47 = vpop.f32.mrf.mxu1 }
 0x593   :  { %v1131_v48 = vpop.f32.mrf.mxu1 }
 0x595   :  { %v1539_v49 = vpop.f32.mrf.mxu1 }
 0x597   :  { %v1144_v50 = vpop.f32.mrf.mxu1 }
 0x599   :  { %v1540_v51 = vpop.f32.mrf.mxu1 }
 0x59b   :  { %v1147_v52 = vpop.f32.mrf.mxu1 }
 0x59c   :  { %1719 = dma.done.wait [#allocation4], 2048  }
 0x59d   :  { %1720 = vsyncadd [#allocation4], 4294965248 }
 0x59e   :  { %1206 = vsyncpa [#allocation3], 1 }
 0x59f   :  { %1207 = vsyncpa [#allocation6], 1 }
 0x5a0   :  { %1208 = vsyncpa [#allocation9], 1 }
 0x5a1   :  { %1209 = vsyncpa [#allocation4], 1 }

</bundles_post_ra>
